<compile_context>
chip_gen: v6e
topology: v6e:2x2x1
jax: 0.10.0
libtpu: 0.0.40
codegen_flags: <defaults>
</compile_context>

<pallas_src>
import jax
import jax.numpy as jnp
from jax.experimental import pallas as pl
from jax.experimental.pallas import tpu as pltpu


def _round_up(n, m):
    return ((n + m - 1) // m) * m


def _pad2d(a, rows, cols):
    r, c = a.shape
    if r == rows and c == cols:
        return a
    return jnp.pad(a, ((0, rows - r), (0, cols - c)))


def _mlp_kernel(x_ref, w1_ref, b1_ref, w2_ref, b2_ref, o_ref):
    # Layer 1: MXU matmul with f32 accumulation, then bias + ReLU on the VPU
    # in f32 (v5e has no bf16 VPU path).
    h = jnp.dot(x_ref[...], w1_ref[...], preferred_element_type=jnp.float32)
    h = jnp.maximum(h + b1_ref[...], 0.0)
    # Layer 2: cast only the matmul operand back to the weight/input dtype
    # (bf16 inputs -> bf16 MXU rate); keep the f32 accumulate.
    out = jnp.dot(h.astype(w2_ref.dtype), w2_ref[...],
                  preferred_element_type=jnp.float32)
    out = out + b2_ref[...]
    o_ref[...] = out.astype(o_ref.dtype)


def _make_call(N_p, K_p, I_p, O_p, tile_m, dtype, vmem_limit,
               single_buffer_weights):
    def resident(shape):
        # Constant index_map -> the block never changes across grid steps, so a
        # single VMEM buffer suffices (halves resident-weight footprint).
        if single_buffer_weights:
            return pl.BlockSpec(shape, lambda i: (0, 0),
                                pipeline_mode=pl.Buffered(1))
        return pl.BlockSpec(shape, lambda i: (0, 0))

    return pl.pallas_call(
        _mlp_kernel,
        out_shape=jax.ShapeDtypeStruct((N_p, O_p), dtype),
        grid_spec=pltpu.PrefetchScalarGridSpec(
            num_scalar_prefetch=0,
            grid=(N_p // tile_m,),
            in_specs=[
                pl.BlockSpec((tile_m, K_p), lambda i: (i, 0)),  # x tile (pipelined)
                resident((K_p, I_p)),                            # W1 (resident)
                resident((1, I_p)),                              # b1
                resident((I_p, O_p)),                            # W2 (resident)
                resident((1, O_p)),                              # b2
            ],
            out_specs=pl.BlockSpec((tile_m, O_p), lambda i: (i, 0)),
        ),
        compiler_params=pltpu.CompilerParams(
            dimension_semantics=("parallel",),   # rows shard across v7x's 2 TCs
            vmem_limit_bytes=vmem_limit,
        ),
    )


def mlp_forward(x, w1, b1, w2, b2, *, tile_m=512):
    """Pallas MLP. x: [N, dim_in]; w1: [dim_in, dim_inner]; b1: [1, dim_inner];
    w2: [dim_inner, dim_out]; b2: [1, dim_out].  Returns (out, embedding=x)."""
    N, dim_in = x.shape
    dim_inner = w1.shape[1]
    dim_out = w2.shape[1]
    dtype = x.dtype
    itemsize = jnp.dtype(dtype).itemsize

    # Lane-dense feature dims: pad every feature axis up to a multiple of 128.
    K_p = _round_up(dim_in, 128)
    I_p = _round_up(dim_inner, 128)
    O_p = _round_up(dim_out, 128)

    # Row tile: as large as possible (amortize grid-step overhead), multiple of
    # 8 (sublane), never larger than the padded row count.
    tile_m = max(8, min(_round_up(tile_m, 8), _round_up(N, 8)))

    # VMEM budget (assume worst case: double-buffered weight windows if the
    # Buffered(1) request is not honored).  Shrink tile_m to stay under a
    # conservative 48 MiB cap -- safe even on v7x's 64 MiB per TensorCore.
    vmem_cap = 48 * 1024 * 1024
    weights_bytes = 2 * (K_p * I_p + I_p * O_p + I_p + O_p) * itemsize

    def tile_bytes(tm):
        return (2 * tm * (K_p + O_p) * itemsize   # double-buffered x / out tiles
                + tm * (I_p + O_p) * 4)           # f32 hidden / accumulator temps

    while tile_m > 8 and weights_bytes + tile_bytes(tile_m) > vmem_cap:
        tile_m = _round_up(tile_m // 2, 8)
    vmem_limit = int(min(max(weights_bytes + 2 * tile_bytes(tile_m), 16 << 20),
                         64 << 20))

    N_p = _round_up(N, tile_m)

    x_p = _pad2d(x, N_p, K_p)
    w1_p = _pad2d(w1.astype(dtype), K_p, I_p)
    b1_p = _pad2d(b1.astype(dtype).reshape(1, -1), 1, I_p)
    w2_p = _pad2d(w2.astype(dtype), I_p, O_p)
    b2_p = _pad2d(b2.astype(dtype).reshape(1, -1), 1, O_p)
    args = (x_p, w1_p, b1_p, w2_p, b2_p)

    try:
        out_p = _make_call(N_p, K_p, I_p, O_p, tile_m, dtype, vmem_limit,
                           single_buffer_weights=True)(*args)
    except Exception:
        # This Pallas/Mosaic version does not accept pipeline_mode on the
        # top-level pallas_call BlockSpecs; use default double-buffering.
        out_p = _make_call(N_p, K_p, I_p, O_p, tile_m, dtype, vmem_limit,
                           single_buffer_weights=False)(*args)

    out = out_p[:N, :dim_out]
    # MLP.forward: dim_in <= 2000 -> return (output, embedding=original input).
    return out, x


def _init_params(key, dim_in, dim_inner, dim_out, dtype=jnp.float32):
    # Deterministic synthetic init (uniform like PyTorch's kaiming-ish bounds).
    k1, k2, k3, k4 = jax.random.split(key, 4)
    lim1 = 1.0 / (dim_in ** 0.5)
    lim2 = 1.0 / (dim_inner ** 0.5)
    w1 = jax.random.uniform(k1, (dim_in, dim_inner), dtype, -lim1, lim1)
    b1 = jax.random.uniform(k2, (1, dim_inner), dtype, -lim1, lim1)
    w2 = jax.random.uniform(k3, (dim_inner, dim_out), dtype, -lim2, lim2)
    b2 = jax.random.uniform(k4, (1, dim_out), dtype, -lim2, lim2)
    return w1, b1, w2, b2


if __name__ == "__main__":
    key = jax.random.PRNGKey(0)
    kx, kp = jax.random.split(key)

    N = 50          # number of nodes / rows (deliberately not a multiple of 8)
    dim_in = 32
    dim_inner = 32  # default: dim_inner = dim_in
    dim_out = 16

    x = jax.random.normal(kx, (N, dim_in), dtype=jnp.float32)
    w1, b1, w2, b2 = _init_params(kp, dim_in, dim_inner, dim_out)

    out, embedding = mlp_forward(x, w1, b1, w2, b2)
    out = jax.block_until_ready(out)
    embedding = jax.block_until_ready(embedding)

    # Pure-JAX reference check.
    ref = jnp.maximum(x @ w1 + b1, 0.0) @ w2 + b2
    assert out.shape == (N, dim_out)
    assert embedding.shape == (N, dim_in)
    assert jnp.allclose(out, ref, atol=1e-5, rtol=1e-5)
    assert jnp.array_equal(embedding, x)

    print("KERNEL_OK")
</pallas_src>

<mosaic_0001>
module attributes {stable_mosaic.version = 11 : i64} {
  func.func @_mlp_kernel(%arg0: i32, %arg1: memref<56x128xf32, #tpu.memory_space<vmem>>, %arg2: memref<128x128xf32, #tpu.memory_space<vmem>>, %arg3: memref<1x128xf32, #tpu.memory_space<vmem>>, %arg4: memref<128x128xf32, #tpu.memory_space<vmem>>, %arg5: memref<1x128xf32, #tpu.memory_space<vmem>>, %arg6: memref<56x128xf32, #tpu.memory_space<vmem>>) attributes {dimension_semantics = [#tpu.dimension_semantics<parallel>], iteration_bounds = array<i64: 1>, scalar_prefetch = 0 : i64, scratch_operands = 0 : i64, tpu.core_type = #tpu.core_type<tc>, window_params = [{transform_indices = @transform_0, window_bounds = array<i64: 56, 128>}, {pipeline_mode = #tpu.pipeline_mode<synchronous>, transform_indices = @transform_1, window_bounds = array<i64: 128, 128>}, {pipeline_mode = #tpu.pipeline_mode<synchronous>, transform_indices = @transform_2, window_bounds = array<i64: 1, 128>}, {pipeline_mode = #tpu.pipeline_mode<synchronous>, transform_indices = @transform_3, window_bounds = array<i64: 128, 128>}, {pipeline_mode = #tpu.pipeline_mode<synchronous>, transform_indices = @transform_4, window_bounds = array<i64: 1, 128>}, {transform_indices = @transform_5, window_bounds = array<i64: 56, 128>}]} {
    %c0 = arith.constant 0 : index
    %c0_0 = arith.constant 0 : index
    %0 = vector.load %arg1[%c0, %c0_0] : memref<56x128xf32, #tpu.memory_space<vmem>>, vector<56x128xf32>
    %c0_1 = arith.constant 0 : index
    %c0_2 = arith.constant 0 : index
    %1 = vector.load %arg2[%c0_1, %c0_2] : memref<128x128xf32, #tpu.memory_space<vmem>>, vector<128x128xf32>
    %cst = arith.constant dense<0.000000e+00> : vector<56x128xf32>
    %2 = tpu.matmul %0, %1, %cst {dimension_numbers = #tpu.dot_dimension_numbers<[1], [0], [0], [1], [0, 0, 1, 1], [], []>} : vector<56x128xf32>, vector<128x128xf32>, vector<56x128xf32> -> vector<56x128xf32>
    %c0_3 = arith.constant 0 : index
    %c0_4 = arith.constant 0 : index
    %3 = vector.load %arg3[%c0_3, %c0_4] : memref<1x128xf32, #tpu.memory_space<vmem>>, vector<1x128xf32>
    %4 = vector.broadcast %3 : vector<1x128xf32> to vector<56x128xf32>
    %5 = arith.addf %2, %4 : vector<56x128xf32>
    %cst_5 = arith.constant 0.000000e+00 : f32
    %6 = vector.broadcast %cst_5 : f32 to vector<56x128xf32>
    %7 = arith.maximumf %5, %6 : vector<56x128xf32>
    %c0_6 = arith.constant 0 : index
    %c0_7 = arith.constant 0 : index
    %8 = vector.load %arg4[%c0_6, %c0_7] : memref<128x128xf32, #tpu.memory_space<vmem>>, vector<128x128xf32>
    %cst_8 = arith.constant dense<0.000000e+00> : vector<56x128xf32>
    %9 = tpu.matmul %7, %8, %cst_8 {dimension_numbers = #tpu.dot_dimension_numbers<[1], [0], [0], [1], [0, 0, 1, 1], [], []>} : vector<56x128xf32>, vector<128x128xf32>, vector<56x128xf32> -> vector<56x128xf32>
    %c0_9 = arith.constant 0 : index
    %c0_10 = arith.constant 0 : index
    %10 = vector.load %arg5[%c0_9, %c0_10] : memref<1x128xf32, #tpu.memory_space<vmem>>, vector<1x128xf32>
    %11 = vector.broadcast %10 : vector<1x128xf32> to vector<56x128xf32>
    %12 = arith.addf %9, %11 : vector<56x128xf32>
    %c0_11 = arith.constant 0 : index
    %c0_12 = arith.constant 0 : index
    %13 = vector.load %arg6[%c0_11, %c0_12] : memref<56x128xf32, #tpu.memory_space<vmem>>, vector<56x128xf32>
    tpu.vector_store %arg6[%c0_11, %c0_12], %12 {strides = array<i32>} : memref<56x128xf32, #tpu.memory_space<vmem>>, vector<56x128xf32>,
    return
  }
  func.func @transform_0(%arg0: i32) -> (i32, i32) {
    %c0_i32 = arith.constant 0 : i32
    %c0_i32_0 = arith.constant 0 : i32
    return %arg0, %c0_i32 : i32, i32
  }
  func.func @transform_1(%arg0: i32) -> (i32, i32) {
    %c0_i32 = arith.constant 0 : i32
    %c0_i32_0 = arith.constant 0 : i32
    %c0_i32_1 = arith.constant 0 : i32
    return %c0_i32, %c0_i32_0 : i32, i32
  }
  func.func @transform_2(%arg0: i32) -> (i32, i32) {
    %c0_i32 = arith.constant 0 : i32
    %c0_i32_0 = arith.constant 0 : i32
    %c0_i32_1 = arith.constant 0 : i32
    return %c0_i32, %c0_i32_0 : i32, i32
  }
  func.func @transform_3(%arg0: i32) -> (i32, i32) {
    %c0_i32 = arith.constant 0 : i32
    %c0_i32_0 = arith.constant 0 : i32
    %c0_i32_1 = arith.constant 0 : i32
    return %c0_i32, %c0_i32_0 : i32, i32
  }
  func.func @transform_4(%arg0: i32) -> (i32, i32) {
    %c0_i32 = arith.constant 0 : i32
    %c0_i32_0 = arith.constant 0 : i32
    %c0_i32_1 = arith.constant 0 : i32
    return %c0_i32, %c0_i32_0 : i32, i32
  }
  func.func @transform_5(%arg0: i32) -> (i32, i32) {
    %c0_i32 = arith.constant 0 : i32
    %c0_i32_0 = arith.constant 0 : i32
    return %arg0, %c0_i32 : i32, i32
  }
}

module attributes {stable_mosaic.version = 11 : i64} {
  func.func @_mlp_kernel(%arg0: i32, %arg1: memref<56x128xf32, #tpu.memory_space<vmem>>, %arg2: memref<128x128xf32, #tpu.memory_space<vmem>>, %arg3: memref<1x128xf32, #tpu.memory_space<vmem>>, %arg4: memref<128x128xf32, #tpu.memory_space<vmem>>, %arg5: memref<1x128xf32, #tpu.memory_space<vmem>>, %arg6: memref<56x128xf32, #tpu.memory_space<vmem>>) attributes {dimension_semantics = [#tpu.dimension_semantics<parallel>], iteration_bounds = array<i64: 1>, scalar_prefetch = 0 : i64, scratch_operands = 0 : i64, tpu.core_type = #tpu.core_type<tc>, window_params = [{transform_indices = @transform_0, window_bounds = array<i64: 56, 128>}, {pipeline_mode = #tpu.pipeline_mode<synchronous>, transform_indices = @transform_1, window_bounds = array<i64: 128, 128>}, {pipeline_mode = #tpu.pipeline_mode<synchronous>, transform_indices = @transform_2, window_bounds = array<i64: 1, 128>}, {pipeline_mode = #tpu.pipeline_mode<synchronous>, transform_indices = @transform_3, window_bounds = array<i64: 128, 128>}, {pipeline_mode = #tpu.pipeline_mode<synchronous>, transform_indices = @transform_4, window_bounds = array<i64: 1, 128>}, {transform_indices = @transform_5, window_bounds = array<i64: 56, 128>}]} {
    %c0 = arith.constant 0 : index
    %c0_0 = arith.constant 0 : index
    %0 = vector.load %arg1[%c0, %c0_0] : memref<56x128xf32, #tpu.memory_space<vmem>>, vector<56x128xf32>
    %c0_1 = arith.constant 0 : index
    %c0_2 = arith.constant 0 : index
    %1 = vector.load %arg2[%c0_1, %c0_2] : memref<128x128xf32, #tpu.memory_space<vmem>>, vector<128x128xf32>
    %cst = arith.constant dense<0.000000e+00> : vector<56x128xf32>
    %2 = tpu.matmul %0, %1, %cst {dimension_numbers = #tpu.dot_dimension_numbers<[1], [0], [0], [1], [0, 0, 1, 1], [], []>} : vector<56x128xf32>, vector<128x128xf32>, vector<56x128xf32> -> vector<56x128xf32>
    %c0_3 = arith.constant 0 : index
    %c0_4 = arith.constant 0 : index
    %3 = vector.load %arg3[%c0_3, %c0_4] : memref<1x128xf32, #tpu.memory_space<vmem>>, vector<1x128xf32>
    %4 = vector.broadcast %3 : vector<1x128xf32> to vector<56x128xf32>
    %5 = arith.addf %2, %4 : vector<56x128xf32>
    %cst_5 = arith.constant 0.000000e+00 : f32
    %6 = vector.broadcast %cst_5 : f32 to vector<56x128xf32>
    %7 = arith.maximumf %5, %6 : vector<56x128xf32>
    %c0_6 = arith.constant 0 : index
    %c0_7 = arith.constant 0 : index
    %8 = vector.load %arg4[%c0_6, %c0_7] : memref<128x128xf32, #tpu.memory_space<vmem>>, vector<128x128xf32>
    %cst_8 = arith.constant dense<0.000000e+00> : vector<56x128xf32>
    %9 = tpu.matmul %7, %8, %cst_8 {dimension_numbers = #tpu.dot_dimension_numbers<[1], [0], [0], [1], [0, 0, 1, 1], [], []>} : vector<56x128xf32>, vector<128x128xf32>, vector<56x128xf32> -> vector<56x128xf32>
    %c0_9 = arith.constant 0 : index
    %c0_10 = arith.constant 0 : index
    %10 = vector.load %arg5[%c0_9, %c0_10] : memref<1x128xf32, #tpu.memory_space<vmem>>, vector<1x128xf32>
    %11 = vector.broadcast %10 : vector<1x128xf32> to vector<56x128xf32>
    %12 = arith.addf %9, %11 : vector<56x128xf32>
    %c0_11 = arith.constant 0 : index
    %c0_12 = arith.constant 0 : index
    %13 = vector.load %arg6[%c0_11, %c0_12] : memref<56x128xf32, #tpu.memory_space<vmem>>, vector<56x128xf32>
    tpu.vector_store %arg6[%c0_11, %c0_12], %12 {strides = array<i32>} : memref<56x128xf32, #tpu.memory_space<vmem>>, vector<56x128xf32>,
    return
  }
  func.func @transform_0(%arg0: i32) -> (i32, i32) {
    %c0_i32 = arith.constant 0 : i32
    %c0_i32_0 = arith.constant 0 : i32
    return %arg0, %c0_i32 : i32, i32
  }
  func.func @transform_1(%arg0: i32) -> (i32, i32) {
    %c0_i32 = arith.constant 0 : i32
    %c0_i32_0 = arith.constant 0 : i32
    %c0_i32_1 = arith.constant 0 : i32
    return %c0_i32, %c0_i32_0 : i32, i32
  }
  func.func @transform_2(%arg0: i32) -> (i32, i32) {
    %c0_i32 = arith.constant 0 : i32
    %c0_i32_0 = arith.constant 0 : i32
    %c0_i32_1 = arith.constant 0 : i32
    return %c0_i32, %c0_i32_0 : i32, i32
  }
  func.func @transform_3(%arg0: i32) -> (i32, i32) {
    %c0_i32 = arith.constant 0 : i32
    %c0_i32_0 = arith.constant 0 : i32
    %c0_i32_1 = arith.constant 0 : i32
    return %c0_i32, %c0_i32_0 : i32, i32
  }
  func.func @transform_4(%arg0: i32) -> (i32, i32) {
    %c0_i32 = arith.constant 0 : i32
    %c0_i32_0 = arith.constant 0 : i32
    %c0_i32_1 = arith.constant 0 : i32
    return %c0_i32, %c0_i32_0 : i32, i32
  }
  func.func @transform_5(%arg0: i32) -> (i32, i32) {
    %c0_i32 = arith.constant 0 : i32
    %c0_i32_0 = arith.constant 0 : i32
    return %arg0, %c0_i32 : i32, i32
  }
}

</mosaic_0001>

<bundles_post_ra>
// kernel: tpu_custom_call.1
= control target key start
LH: loop header
LB: loop body
LE: loop exit
PB: predicated region body
PF: predicated region fallthrough
CT: control target
= control target key end

     0   :  { %10 = vsyncpa [#allocation3], 0  ;;  %s723_s0 = inlined_call_operand.hbm [shape: f32[56,128], index: 0, kind: input, shape index: {}]   ;;  %s724_s1 = inlined_call_operand.hbm [shape: f32[128,128], index: 1, kind: input, shape index: {}]   ;;  %s725_s2 = inlined_call_operand.vmem [shape: f32[1,128], index: 2, kind: input, shape index: {}]   ;;  %s726_s3 = inlined_call_operand.hbm [shape: f32[128,128], index: 3, kind: input, shape index: {}]   ;;  %s727_s4 = inlined_call_operand.vmem [shape: f32[1,128], index: 4, kind: input, shape index: {}]   ;;  %s728_s5 = inlined_call_operand.hbm [shape: f32[56,128], index: 5, kind: output, shape index: {}]  }
   0x1   :  { %11 = vsyncpa [#allocation6], 0 }
   0x2   :  { %12 = vsyncpa [#allocation4], 0  ;;  %s595_s18 = smov [#allocation5]   ;;  %s596_s20 = smov [#allocation2]  }
   0x3   :  { %s30_s19 = sshll.u32 %s595_s18, 4  ;;  %s18_s21 = sshll.u32 %s596_s20, 4  ;;  %s31_s19 = int_to_ptr.vmem [resolvable:$true] %s30_s19  ;;  %s19_s21 = int_to_ptr.vmem [resolvable:$true] %s18_s21 }
   0x4   :  { %s517_s22 = scalar_lea.vmem %s31_s19, 2048  ;;  %p522_p1 = scmp.lt.s32.totalorder %s31_s19, %s31_s19 }
   0x5   :  { %p518_p0 = scmp.ne.s32.totalorder %s31_s19, %s517_s22  ;;  %p523_p2 = scmp.lt.s32.totalorder %s517_s22, %s517_s22 }
   0x7   :  { %p524_p3 = por %p523_p2, %p522_p1 }
   0x9   :  { %p525_p4 = pnand %p524_p3, %p518_p0 }
   0xb   :  { %528 = shalt.err (!%p525_p4)
}
   0xc   :  { %s597_s23 = smov 128   ;;  %s598_s24 = smov 8  }
   0xd   :  { %36 = dma.hbm_to_vmem [thread:$0]  %s724_s1, 2048, %s31_s19, [#allocation6], %s597_s23, %s597_s23, %s598_s24  }
   0xe   :  { %s537_s27 = scalar_lea.vmem %s19_s21, 896  ;;  %p542_p6 = scmp.lt.s32.totalorder %s19_s21, %s19_s21 }
   0xf   :  { %p538_p5 = scmp.ne.s32.totalorder %s19_s21, %s537_s27  ;;  %p543_p7 = scmp.lt.s32.totalorder %s537_s27, %s537_s27 }
  0x11   :  { %p544_p8 = por %p543_p7, %p542_p6 }
  0x13   :  { %p545_p9 = pnand %p544_p8, %p538_p5 }
  0x15   :  { %548 = shalt.err (!%p545_p9)
}
  0x16   :  { %24 = dma.hbm_to_vmem [thread:$0]  %s723_s0, 896, %s19_s21, [#allocation3], %s597_s23, %s597_s23, %s598_s24  }
  0x17   :  { %s599_s30 = smov [#allocation7]  }
  0x18   :  { %s44_s6 = sshll.u32 %s599_s30, 4  ;;  %s45_s6 = int_to_ptr.vmem [resolvable:$true] %s44_s6 }
  0x19   :  { %s557_s7 = scalar_lea.vmem %s45_s6, 2048  ;;  %p562_p11 = scmp.lt.s32.totalorder %s45_s6, %s45_s6 }
  0x1a   :  { %p558_p10 = scmp.ne.s32.totalorder %s45_s6, %s557_s7  ;;  %p563_p12 = scmp.lt.s32.totalorder %s557_s7, %s557_s7 }
  0x1c   :  { %p564_p13 = por %p563_p12, %p562_p11 }
  0x1e   :  { %p565_p0 = pnand %p564_p13, %p558_p10 }
  0x20   :  { %568 = shalt.err (!%p565_p0)
}
  0x21   :  { %50 = dma.hbm_to_vmem [thread:$0]  %s726_s3, 2048, %s45_s6, [#allocation6], %s597_s23, %s597_s23, %s598_s24  }
  0x22   :  { %589 = dma.done.wait [#allocation3], 896  }
  0x23   :  { %590 = vsyncadd [#allocation3], 4294966400 }
  0x24   :  { %591 = dma.done.wait [#allocation6], 4096  }
  0x25   :  { %592 = vsyncadd [#allocation6], 4294963200  ;;  %v600_v0 = vmov 0.0   ;;  %vm601_vm0 = vmmov 0   ;;  %v84_v1 = vld [vmem:[#allocation5 + $0x78] sm:$0xff]  ;;  %v83_v2 = vld [vmem:[#allocation5 + $0x70] sm:$0xff] }
  0x26   :  { %395 = vmatprep.subr.mxu0 %v600_v0  ;;  %427 = vmatprep.mubr.msk.f32.mxu0 %vm601_vm0, %v600_v0  ;;  %v82_v3 = vld [vmem:[#allocation5 + $0x68] sm:$0xff]  ;;  %v81_v4 = vld [vmem:[#allocation5 + $0x60] sm:$0xff]  ;;  %v80_v5 = vld [vmem:[#allocation5 + $0x58] sm:$0xff] }
  0x27   :  { %448 = vmatprep.subr.mxu1 %v600_v0  ;;  %480 = vmatprep.mubr.msk.f32.mxu1 %vm601_vm0, %v600_v0  ;;  %v214_v6 = vld [vmem:[#allocation7 + $0x78] sm:$0xff]  ;;  %v79_v7 = vld [vmem:[#allocation5 + $0x50] sm:$0xff]  ;;  %v212_v9 = vld [vmem:[#allocation7 + $0x68] sm:$0xff] }
  0x28   :  { %396 = vmatpush3.msra.mxu0 %v84_v1  ;;  %449 = vmatpush3.msra.mxu1 %v214_v6  ;;  %v213_v8 = vld [vmem:[#allocation7 + $0x70] sm:$0xff]  ;;  %v78_v10 = vld [vmem:[#allocation5 + $0x48] sm:$0xff]  ;;  %v211_v11 = vld [vmem:[#allocation7 + $0x60] sm:$0xff] }
  0x29   :  { %397 = vmatprep.subr.mxu0 %v600_v0  ;;  %450 = vmatprep.subr.mxu1 %v600_v0  ;;  %v77_v12 = vld [vmem:[#allocation5 + $0x40] sm:$0xff]  ;;  %v210_v13 = vld [vmem:[#allocation7 + $0x58] sm:$0xff]  ;;  %v209_v15 = vld [vmem:[#allocation7 + $0x50] sm:$0xff] }
  0x2a   :  { %398 = vmatpush3.msra.mxu0 %v83_v2  ;;  %451 = vmatpush3.msra.mxu1 %v213_v8  ;;  %v76_v14 = vld [vmem:[#allocation5 + $0x38] sm:$0xff]  ;;  %v75_v16 = vld [vmem:[#allocation5 + $0x30] sm:$0xff]  ;;  %v208_v17 = vld [vmem:[#allocation7 + $0x48] sm:$0xff] }
  0x2b   :  { %399 = vmatprep.subr.mxu0 %v600_v0  ;;  %452 = vmatprep.subr.mxu1 %v600_v0  ;;  %v74_v18 = vld [vmem:[#allocation5 + $0x28] sm:$0xff]  ;;  %v207_v19 = vld [vmem:[#allocation7 + $0x40] sm:$0xff]  ;;  %v206_v21 = vld [vmem:[#allocation7 + $0x38] sm:$0xff] }
  0x2c   :  { %400 = vmatpush3.msra.mxu0 %v82_v3  ;;  %453 = vmatpush3.msra.mxu1 %v212_v9  ;;  %v73_v20 = vld [vmem:[#allocation5 + $0x20] sm:$0xff]  ;;  %v72_v22 = vld [vmem:[#allocation5 + $0x18] sm:$0xff]  ;;  %v205_v23 = vld [vmem:[#allocation7 + $0x30] sm:$0xff] }
  0x2d   :  { %401 = vmatprep.subr.mxu0 %v600_v0  ;;  %454 = vmatprep.subr.mxu1 %v600_v0  ;;  %v71_v24 = vld [vmem:[#allocation5 + $0x10] sm:$0xff]  ;;  %v204_v25 = vld [vmem:[#allocation7 + $0x28] sm:$0xff]  ;;  %v203_v27 = vld [vmem:[#allocation7 + $0x20] sm:$0xff] }
  0x2e   :  { %402 = vmatpush3.msra.mxu0 %v81_v4  ;;  %455 = vmatpush3.msra.mxu1 %v211_v11  ;;  %v70_v26 = vld [vmem:[#allocation5 + $0x8] sm:$0xff]  ;;  %v69_v28 = vld [vmem:[#allocation5] sm:$0xff]  ;;  %v202_v30 = vld [vmem:[#allocation7 + $0x18] sm:$0xff] }
  0x2f   :  { %403 = vmatprep.subr.mxu0 %v600_v0  ;;  %456 = vmatprep.subr.mxu1 %v600_v0  ;;  %v62_v29 = vld [vmem:[#allocation2] sm:$0xff]  ;;  %v63_v31 = vld [vmem:[#allocation2 + $0x8] sm:$0xff]  ;;  %v64_v32 = vld [vmem:[#allocation2 + $0x10] sm:$0xff] }
  0x30   :  { %404 = vmatpush3.msra.mxu0 %v80_v5  ;;  %457 = vmatpush3.msra.mxu1 %v210_v13  ;;  %v65_v33 = vld [vmem:[#allocation2 + $0x18] sm:$0xff]  ;;  %v66_v34 = vld [vmem:[#allocation2 + $0x20] sm:$0xff]  ;;  %v67_v35 = vld [vmem:[#allocation2 + $0x28] sm:$0xff] }
  0x31   :  { %405 = vmatprep.subr.mxu0 %v600_v0  ;;  %458 = vmatprep.subr.mxu1 %v600_v0  ;;  %v68_v36 = vld [vmem:[#allocation2 + $0x30] sm:$0xff]  ;;  %v201_v37 = vld [vmem:[#allocation7 + $0x10] sm:$0xff]  ;;  %v200_v38 = vld [vmem:[#allocation7 + $0x8] sm:$0xff] }
  0x32   :  { %406 = vmatpush3.msra.mxu0 %v79_v7  ;;  %459 = vmatpush3.msra.mxu1 %v209_v15  ;;  %v199_v39 = vld [vmem:[#allocation7] sm:$0xff]  ;;  %v347_v40 = vld [vmem:[%s725_s2] ss:$0 sm:$0xff] }
  0x33   :  { %407 = vmatprep.subr.mxu0 %v600_v0  ;;  %460 = vmatprep.subr.mxu1 %v600_v0  ;;  %v348_v6 = vld [vmem:[%s727_s4] ss:$0 sm:$0xff]  ;;  %s602_s4 = smov [#allocation8]  }
  0x34   :  { %408 = vmatpush3.msra.mxu0 %v78_v10  ;;  %461 = vmatpush3.msra.mxu1 %v208_v17  ;;  %s334_s10 = sshll.u32 %s602_s4, 4  ;;  %s335_s10 = int_to_ptr.vmem [resolvable:$true] %s334_s10 }
  0x35   :  { %409 = vmatprep.subr.mxu0 %v600_v0  ;;  %462 = vmatprep.subr.mxu1 %v600_v0  ;;  %s569_s11 = scalar_lea.vmem %s335_s10, 896  ;;  %p574_p2 = scmp.lt.s32.totalorder %s335_s10, %s335_s10 }
  0x36   :  { %410 = vmatpush3.msra.mxu0 %v77_v12  ;;  %463 = vmatpush3.msra.mxu1 %v207_v19  ;;  %p570_p1 = scmp.ne.s32.totalorder %s335_s10, %s569_s11  ;;  %p575_p3 = scmp.lt.s32.totalorder %s569_s11, %s569_s11 }
  0x37   :  { %411 = vmatprep.subr.mxu0 %v600_v0  ;;  %464 = vmatprep.subr.mxu1 %v600_v0 }
  0x38   :  { %412 = vmatpush3.msra.mxu0 %v76_v14  ;;  %465 = vmatpush3.msra.mxu1 %v206_v21  ;;  %p576_p4 = por %p575_p3, %p574_p2 }
  0x39   :  { %413 = vmatprep.subr.mxu0 %v600_v0  ;;  %466 = vmatprep.subr.mxu1 %v600_v0 }
  0x3a   :  { %414 = vmatpush3.msra.mxu0 %v75_v16  ;;  %467 = vmatpush3.msra.mxu1 %v205_v23  ;;  %p577_p5 = pnand %p576_p4, %p570_p1 }
  0x3b   :  { %415 = vmatprep.subr.mxu0 %v600_v0  ;;  %468 = vmatprep.subr.mxu1 %v600_v0 }
  0x3c   :  { %416 = vmatpush3.msra.mxu0 %v74_v18  ;;  %469 = vmatpush3.msra.mxu1 %v204_v25 }
  0x3d   :  { %417 = vmatprep.subr.mxu0 %v600_v0  ;;  %470 = vmatprep.subr.mxu1 %v600_v0 }
  0x3e   :  { %418 = vmatpush3.msra.mxu0 %v73_v20  ;;  %471 = vmatpush3.msra.mxu1 %v203_v27 }
  0x3f   :  { %419 = vmatprep.subr.mxu0 %v600_v0  ;;  %472 = vmatprep.subr.mxu1 %v600_v0 }
  0x40   :  { %420 = vmatpush3.msra.mxu0 %v72_v22  ;;  %473 = vmatpush3.msra.mxu1 %v202_v30 }
  0x41   :  { %421 = vmatprep.subr.mxu0 %v600_v0  ;;  %474 = vmatprep.subr.mxu1 %v600_v0 }
  0x42   :  { %422 = vmatpush3.msra.mxu0 %v71_v24  ;;  %475 = vmatpush3.msra.mxu1 %v201_v37 }
  0x43   :  { %423 = vmatprep.subr.mxu0 %v600_v0  ;;  %476 = vmatprep.subr.mxu1 %v600_v0 }
  0x44   :  { %424 = vmatpush3.msra.mxu0 %v70_v26  ;;  %477 = vmatpush3.msra.mxu1 %v200_v38 }
  0x45   :  { %425 = vmatprep.subr.mxu0 %v600_v0  ;;  %478 = vmatprep.subr.mxu1 %v600_v0 }
  0x46   :  { %426 = vmatpush3.msra.mxu0 %v69_v28  ;;  %479 = vmatpush3.msra.mxu1 %v199_v39 }
  0x47   :  { %428 = vmatmul.mubr.f32.vlgmr.msra.gmra.mxu0 %v62_v29 }
  0x48   :  { %430 = vmatprep.mubr.msk.f32.mxu0 %vm601_vm0, %v600_v0 }
  0x4b   :  { %431 = vmatmul.mubr.f32.gmra.mxu0 %v63_v31 }
  0x4c   :  { %433 = vmatprep.mubr.msk.f32.mxu0 %vm601_vm0, %v600_v0 }
  0x4f   :  { %434 = vmatmul.mubr.f32.gmra.mxu0 %v64_v32 }
  0x50   :  { %436 = vmatprep.mubr.msk.f32.mxu0 %vm601_vm0, %v600_v0 }
  0x53   :  { %437 = vmatmul.mubr.f32.gmra.mxu0 %v65_v33 }
  0x54   :  { %439 = vmatprep.mubr.msk.f32.mxu0 %vm601_vm0, %v600_v0 }
  0x57   :  { %440 = vmatmul.mubr.f32.gmra.mxu0 %v66_v34 }
  0x58   :  { %442 = vmatprep.mubr.msk.f32.mxu0 %vm601_vm0, %v600_v0 }
  0x5b   :  { %443 = vmatmul.mubr.f32.gmra.mxu0 %v67_v35 }
  0x5c   :  { %445 = vmatprep.mubr.msk.f32.mxu0 %vm601_vm0, %v600_v0 }
  0x5f   :  { %446 = vmatmul.mubr.f32.gmra.mxu0 %v68_v36 }
 0x107   :  { %v158_v41 = vpop.f32.mrf.mxu0 }
 0x108   :  { %v159_v42 = vadd.f32 %v347_v40, %v158_v41 }
 0x109   :  { %v429_v43 = vpop.f32.mrf.mxu0 }
 0x10a   :  { %v192_v44 = vmax.f32 %v159_v42, 0.0 }
 0x10b   :  { %v163_v45 = vpop.f32.mrf.mxu0 }
 0x10c   :  { %v164_v46 = vadd.f32 %v347_v40, %v163_v45  ;;  %481 = vmatmul.mubr.f32.vlgmr.msra.gmra.mxu1 %v192_v44 }
 0x10d   :  { %v432_v47 = vpop.f32.mrf.mxu0  ;;  %483 = vmatprep.mubr.msk.f32.mxu1 %vm601_vm0, %v600_v0 }
 0x10e   :  { %v193_v48 = vmax.f32 %v164_v46, 0.0 }
 0x10f   :  { %v168_v49 = vpop.f32.mrf.mxu0 }
 0x110   :  { %v169_v50 = vadd.f32 %v347_v40, %v168_v49  ;;  %484 = vmatmul.mubr.f32.gmra.mxu1 %v193_v48 }
 0x111   :  { %v435_v51 = vpop.f32.mrf.mxu0  ;;  %486 = vmatprep.mubr.msk.f32.mxu1 %vm601_vm0, %v600_v0 }
 0x112   :  { %v194_v52 = vmax.f32 %v169_v50, 0.0 }
 0x113   :  { %v173_v53 = vpop.f32.mrf.mxu0 }
 0x114   :  { %v174_v54 = vadd.f32 %v347_v40, %v173_v53  ;;  %487 = vmatmul.mubr.f32.gmra.mxu1 %v194_v52 }
 0x115   :  { %v438_v55 = vpop.f32.mrf.mxu0  ;;  %489 = vmatprep.mubr.msk.f32.mxu1 %vm601_vm0, %v600_v0 }
 0x116   :  { %v195_v56 = vmax.f32 %v174_v54, 0.0 }
 0x117   :  { %v178_v57 = vpop.f32.mrf.mxu0 }
 0x118   :  { %v179_v58 = vadd.f32 %v347_v40, %v178_v57  ;;  %490 = vmatmul.mubr.f32.gmra.mxu1 %v195_v56 }
 0x119   :  { %v441_v59 = vpop.f32.mrf.mxu0  ;;  %492 = vmatprep.mubr.msk.f32.mxu1 %vm601_vm0, %v600_v0 }
 0x11a   :  { %v196_v60 = vmax.f32 %v179_v58, 0.0 }
 0x11b   :  { %v183_v61 = vpop.f32.mrf.mxu0 }
 0x11c   :  { %v184_v62 = vadd.f32 %v347_v40, %v183_v61  ;;  %493 = vmatmul.mubr.f32.gmra.mxu1 %v196_v60 }
 0x11d   :  { %v444_v63 = vpop.f32.mrf.mxu0  ;;  %495 = vmatprep.mubr.msk.f32.mxu1 %vm601_vm0, %v600_v0 }
 0x11e   :  { %v197_v1 = vmax.f32 %v184_v62, 0.0 }
 0x11f   :  { %v188_v2 = vpop.f32.mrf.mxu0 }
 0x120   :  { %v189_v3 = vadd.f32 %v347_v40, %v188_v2  ;;  %496 = vmatmul.mubr.f32.gmra.mxu1 %v197_v1 }
 0x121   :  { %v447_v4 = vpop.f32.mrf.mxu0  ;;  %498 = vmatprep.mubr.msk.f32.mxu1 %vm601_vm0, %v600_v0 }
 0x122   :  { %v198_v5 = vmax.f32 %v189_v3, 0.0 }
 0x124   :  { %499 = vmatmul.mubr.f32.gmra.mxu1 %v198_v5 }
 0x1cc   :  { %v288_v7 = vpop.f32.mrf.mxu1 }
 0x1cd   :  { %v289_v8 = vadd.f32 %v348_v6, %v288_v7 }
 0x1ce   :  { %v482_v9 = vpop.f32.mrf.mxu1 }
 0x1cf   :  { %322 = vst [vmem:[#allocation8] sm:$0xff] %v289_v8 }
 0x1d0   :  { %v293_v10 = vpop.f32.mrf.mxu1 }
 0x1d1   :  { %v294_v11 = vadd.f32 %v348_v6, %v293_v10 }
 0x1d2   :  { %v485_v12 = vpop.f32.mrf.mxu1 }
 0x1d3   :  { %323 = vst [vmem:[#allocation8 + $0x8] sm:$0xff] %v294_v11 }
 0x1d4   :  { %v298_v13 = vpop.f32.mrf.mxu1 }
 0x1d5   :  { %v299_v14 = vadd.f32 %v348_v6, %v298_v13 }
 0x1d6   :  { %v488_v15 = vpop.f32.mrf.mxu1 }
 0x1d7   :  { %324 = vst [vmem:[#allocation8 + $0x10] sm:$0xff] %v299_v14 }
 0x1d8   :  { %v303_v16 = vpop.f32.mrf.mxu1 }
 0x1d9   :  { %v304_v0 = vadd.f32 %v348_v6, %v303_v16 }
 0x1da   :  { %v491_v17 = vpop.f32.mrf.mxu1 }
 0x1db   :  { %325 = vst [vmem:[#allocation8 + $0x18] sm:$0xff] %v304_v0 }
 0x1dc   :  { %v308_v18 = vpop.f32.mrf.mxu1 }
 0x1dd   :  { %v309_v19 = vadd.f32 %v348_v6, %v308_v18 }
 0x1de   :  { %v494_v20 = vpop.f32.mrf.mxu1 }
 0x1df   :  { %326 = vst [vmem:[#allocation8 + $0x20] sm:$0xff] %v309_v19 }
 0x1e0   :  { %v313_v21 = vpop.f32.mrf.mxu1 }
 0x1e1   :  { %v314_v22 = vadd.f32 %v348_v6, %v313_v21 }
 0x1e2   :  { %v497_v23 = vpop.f32.mrf.mxu1 }
 0x1e3   :  { %327 = vst [vmem:[#allocation8 + $0x28] sm:$0xff] %v314_v22 }
 0x1e4   :  { %v318_v24 = vpop.f32.mrf.mxu1 }
 0x1e5   :  { %v319_v25 = vadd.f32 %v348_v6, %v318_v24 }
 0x1e6   :  { %v500_v26 = vpop.f32.mrf.mxu1 }
 0x1e7   :  { %328 = vst [vmem:[#allocation8 + $0x30] sm:$0xff] %v319_v25 }
 0x1e8   :  { %580 = shalt.err (!%p577_p5)
}
 0x1e9   :  { %340 = dma.vmem_to_hbm [thread:$0]  %s335_s10, 896, %s728_s5, [#allocation4], %s597_s23, %s597_s23, %s598_s24  }
 0x1ea   :  { %593 = dma.done.wait [#allocation4], 896  }
 0x1eb   :  { %594 = vsyncadd [#allocation4], 4294966400 }
 0x1ec   :  { %344 = vsyncpa [#allocation3], 1 }
 0x1ed   :  { %345 = vsyncpa [#allocation6], 1 }
 0x1ee   :  { %346 = vsyncpa [#allocation4], 1 }

// kernel: tpu_custom_call.1
= control target key start
LH: loop header
LB: loop body
LE: loop exit
PB: predicated region body
PF: predicated region fallthrough
CT: control target
= control target key end

     0   :  { %10 = vsyncpa [#allocation3], 0  ;;  %s723_s0 = inlined_call_operand.hbm [shape: f32[56,128], index: 0, kind: input, shape index: {}]   ;;  %s724_s1 = inlined_call_operand.hbm [shape: f32[128,128], index: 1, kind: input, shape index: {}]   ;;  %s725_s2 = inlined_call_operand.vmem [shape: f32[1,128], index: 2, kind: input, shape index: {}]   ;;  %s726_s3 = inlined_call_operand.hbm [shape: f32[128,128], index: 3, kind: input, shape index: {}]   ;;  %s727_s4 = inlined_call_operand.vmem [shape: f32[1,128], index: 4, kind: input, shape index: {}]   ;;  %s728_s5 = inlined_call_operand.hbm [shape: f32[56,128], index: 5, kind: output, shape index: {}]  }
   0x1   :  { %11 = vsyncpa [#allocation6], 0 }
   0x2   :  { %12 = vsyncpa [#allocation4], 0  ;;  %s595_s18 = smov [#allocation5]   ;;  %s596_s20 = smov [#allocation2]  }
   0x3   :  { %s30_s19 = sshll.u32 %s595_s18, 4  ;;  %s18_s21 = sshll.u32 %s596_s20, 4  ;;  %s31_s19 = int_to_ptr.vmem [resolvable:$true] %s30_s19  ;;  %s19_s21 = int_to_ptr.vmem [resolvable:$true] %s18_s21 }
   0x4   :  { %s517_s22 = scalar_lea.vmem %s31_s19, 2048  ;;  %p522_p1 = scmp.lt.s32.totalorder %s31_s19, %s31_s19 }
   0x5   :  { %p518_p0 = scmp.ne.s32.totalorder %s31_s19, %s517_s22  ;;  %p523_p2 = scmp.lt.s32.totalorder %s517_s22, %s517_s22 }
   0x7   :  { %p524_p3 = por %p523_p2, %p522_p1 }
   0x9   :  { %p525_p4 = pnand %p524_p3, %p518_p0 }
   0xb   :  { %528 = shalt.err (!%p525_p4)
}
   0xc   :  { %s597_s23 = smov 128   ;;  %s598_s24 = smov 8  }
   0xd   :  { %36 = dma.hbm_to_vmem [thread:$0]  %s724_s1, 2048, %s31_s19, [#allocation6], %s597_s23, %s597_s23, %s598_s24  }
   0xe   :  { %s537_s27 = scalar_lea.vmem %s19_s21, 896  ;;  %p542_p6 = scmp.lt.s32.totalorder %s19_s21, %s19_s21 }
   0xf   :  { %p538_p5 = scmp.ne.s32.totalorder %s19_s21, %s537_s27  ;;  %p543_p7 = scmp.lt.s32.totalorder %s537_s27, %s537_s27 }
  0x11   :  { %p544_p8 = por %p543_p7, %p542_p6 }
  0x13   :  { %p545_p9 = pnand %p544_p8, %p538_p5 }
  0x15   :  { %548 = shalt.err (!%p545_p9)
}
  0x16   :  { %24 = dma.hbm_to_vmem [thread:$0]  %s723_s0, 896, %s19_s21, [#allocation3], %s597_s23, %s597_s23, %s598_s24  }
  0x17   :  { %s599_s30 = smov [#allocation7]  }
  0x18   :  { %s44_s6 = sshll.u32 %s599_s30, 4  ;;  %s45_s6 = int_to_ptr.vmem [resolvable:$true] %s44_s6 }
  0x19   :  { %s557_s7 = scalar_lea.vmem %s45_s6, 2048  ;;  %p562_p11 = scmp.lt.s32.totalorder %s45_s6, %s45_s6 }
  0x1a   :  { %p558_p10 = scmp.ne.s32.totalorder %s45_s6, %s557_s7  ;;  %p563_p12 = scmp.lt.s32.totalorder %s557_s7, %s557_s7 }
  0x1c   :  { %p564_p13 = por %p563_p12, %p562_p11 }
  0x1e   :  { %p565_p0 = pnand %p564_p13, %p558_p10 }
  0x20   :  { %568 = shalt.err (!%p565_p0)
}
  0x21   :  { %50 = dma.hbm_to_vmem [thread:$0]  %s726_s3, 2048, %s45_s6, [#allocation6], %s597_s23, %s597_s23, %s598_s24  }
  0x22   :  { %589 = dma.done.wait [#allocation3], 896  }
  0x23   :  { %590 = vsyncadd [#allocation3], 4294966400 }
  0x24   :  { %591 = dma.done.wait [#allocation6], 4096  }
  0x25   :  { %592 = vsyncadd [#allocation6], 4294963200  ;;  %v600_v0 = vmov 0.0   ;;  %vm601_vm0 = vmmov 0   ;;  %v84_v1 = vld [vmem:[#allocation5 + $0x78] sm:$0xff]  ;;  %v83_v2 = vld [vmem:[#allocation5 + $0x70] sm:$0xff] }
  0x26   :  { %395 = vmatprep.subr.mxu0 %v600_v0  ;;  %427 = vmatprep.mubr.msk.f32.mxu0 %vm601_vm0, %v600_v0  ;;  %v82_v3 = vld [vmem:[#allocation5 + $0x68] sm:$0xff]  ;;  %v81_v4 = vld [vmem:[#allocation5 + $0x60] sm:$0xff]  ;;  %v80_v5 = vld [vmem:[#allocation5 + $0x58] sm:$0xff] }
  0x27   :  { %448 = vmatprep.subr.mxu1 %v600_v0  ;;  %480 = vmatprep.mubr.msk.f32.mxu1 %vm601_vm0, %v600_v0  ;;  %v214_v6 = vld [vmem:[#allocation7 + $0x78] sm:$0xff]  ;;  %v79_v7 = vld [vmem:[#allocation5 + $0x50] sm:$0xff]  ;;  %v212_v9 = vld [vmem:[#allocation7 + $0x68] sm:$0xff] }
  0x28   :  { %396 = vmatpush3.msra.mxu0 %v84_v1  ;;  %449 = vmatpush3.msra.mxu1 %v214_v6  ;;  %v213_v8 = vld [vmem:[#allocation7 + $0x70] sm:$0xff]  ;;  %v78_v10 = vld [vmem:[#allocation5 + $0x48] sm:$0xff]  ;;  %v211_v11 = vld [vmem:[#allocation7 + $0x60] sm:$0xff] }
  0x29   :  { %397 = vmatprep.subr.mxu0 %v600_v0  ;;  %450 = vmatprep.subr.mxu1 %v600_v0  ;;  %v77_v12 = vld [vmem:[#allocation5 + $0x40] sm:$0xff]  ;;  %v210_v13 = vld [vmem:[#allocation7 + $0x58] sm:$0xff]  ;;  %v209_v15 = vld [vmem:[#allocation7 + $0x50] sm:$0xff] }
  0x2a   :  { %398 = vmatpush3.msra.mxu0 %v83_v2  ;;  %451 = vmatpush3.msra.mxu1 %v213_v8  ;;  %v76_v14 = vld [vmem:[#allocation5 + $0x38] sm:$0xff]  ;;  %v75_v16 = vld [vmem:[#allocation5 + $0x30] sm:$0xff]  ;;  %v208_v17 = vld [vmem:[#allocation7 + $0x48] sm:$0xff] }
  0x2b   :  { %399 = vmatprep.subr.mxu0 %v600_v0  ;;  %452 = vmatprep.subr.mxu1 %v600_v0  ;;  %v74_v18 = vld [vmem:[#allocation5 + $0x28] sm:$0xff]  ;;  %v207_v19 = vld [vmem:[#allocation7 + $0x40] sm:$0xff]  ;;  %v206_v21 = vld [vmem:[#allocation7 + $0x38] sm:$0xff] }
  0x2c   :  { %400 = vmatpush3.msra.mxu0 %v82_v3  ;;  %453 = vmatpush3.msra.mxu1 %v212_v9  ;;  %v73_v20 = vld [vmem:[#allocation5 + $0x20] sm:$0xff]  ;;  %v72_v22 = vld [vmem:[#allocation5 + $0x18] sm:$0xff]  ;;  %v205_v23 = vld [vmem:[#allocation7 + $0x30] sm:$0xff] }
  0x2d   :  { %401 = vmatprep.subr.mxu0 %v600_v0  ;;  %454 = vmatprep.subr.mxu1 %v600_v0  ;;  %v71_v24 = vld [vmem:[#allocation5 + $0x10] sm:$0xff]  ;;  %v204_v25 = vld [vmem:[#allocation7 + $0x28] sm:$0xff]  ;;  %v203_v27 = vld [vmem:[#allocation7 + $0x20] sm:$0xff] }
  0x2e   :  { %402 = vmatpush3.msra.mxu0 %v81_v4  ;;  %455 = vmatpush3.msra.mxu1 %v211_v11  ;;  %v70_v26 = vld [vmem:[#allocation5 + $0x8] sm:$0xff]  ;;  %v69_v28 = vld [vmem:[#allocation5] sm:$0xff]  ;;  %v202_v30 = vld [vmem:[#allocation7 + $0x18] sm:$0xff] }
  0x2f   :  { %403 = vmatprep.subr.mxu0 %v600_v0  ;;  %456 = vmatprep.subr.mxu1 %v600_v0  ;;  %v62_v29 = vld [vmem:[#allocation2] sm:$0xff]  ;;  %v63_v31 = vld [vmem:[#allocation2 + $0x8] sm:$0xff]  ;;  %v64_v32 = vld [vmem:[#allocation2 + $0x10] sm:$0xff] }
  0x30   :  { %404 = vmatpush3.msra.mxu0 %v80_v5  ;;  %457 = vmatpush3.msra.mxu1 %v210_v13  ;;  %v65_v33 = vld [vmem:[#allocation2 + $0x18] sm:$0xff]  ;;  %v66_v34 = vld [vmem:[#allocation2 + $0x20] sm:$0xff]  ;;  %v67_v35 = vld [vmem:[#allocation2 + $0x28] sm:$0xff] }
  0x31   :  { %405 = vmatprep.subr.mxu0 %v600_v0  ;;  %458 = vmatprep.subr.mxu1 %v600_v0  ;;  %v68_v36 = vld [vmem:[#allocation2 + $0x30] sm:$0xff]  ;;  %v201_v37 = vld [vmem:[#allocation7 + $0x10] sm:$0xff]  ;;  %v200_v38 = vld [vmem:[#allocation7 + $0x8] sm:$0xff] }
  0x32   :  { %406 = vmatpush3.msra.mxu0 %v79_v7  ;;  %459 = vmatpush3.msra.mxu1 %v209_v15  ;;  %v199_v39 = vld [vmem:[#allocation7] sm:$0xff]  ;;  %v347_v40 = vld [vmem:[%s725_s2] ss:$0 sm:$0xff] }
  0x33   :  { %407 = vmatprep.subr.mxu0 %v600_v0  ;;  %460 = vmatprep.subr.mxu1 %v600_v0  ;;  %v348_v6 = vld [vmem:[%s727_s4] ss:$0 sm:$0xff]  ;;  %s602_s4 = smov [#allocation8]  }
  0x34   :  { %408 = vmatpush3.msra.mxu0 %v78_v10  ;;  %461 = vmatpush3.msra.mxu1 %v208_v17  ;;  %s334_s10 = sshll.u32 %s602_s4, 4  ;;  %s335_s10 = int_to_ptr.vmem [resolvable:$true] %s334_s10 }
  0x35   :  { %409 = vmatprep.subr.mxu0 %v600_v0  ;;  %462 = vmatprep.subr.mxu1 %v600_v0  ;;  %s569_s11 = scalar_lea.vmem %s335_s10, 896  ;;  %p574_p2 = scmp.lt.s32.totalorder %s335_s10, %s335_s10 }
  0x36   :  { %410 = vmatpush3.msra.mxu0 %v77_v12  ;;  %463 = vmatpush3.msra.mxu1 %v207_v19  ;;  %p570_p1 = scmp.ne.s32.totalorder %s335_s10, %s569_s11  ;;  %p575_p3 = scmp.lt.s32.totalorder %s569_s11, %s569_s11 }
  0x37   :  { %411 = vmatprep.subr.mxu0 %v600_v0  ;;  %464 = vmatprep.subr.mxu1 %v600_v0 }
  0x38   :  { %412 = vmatpush3.msra.mxu0 %v76_v14  ;;  %465 = vmatpush3.msra.mxu1 %v206_v21  ;;  %p576_p4 = por %p575_p3, %p574_p2 }
  0x39   :  { %413 = vmatprep.subr.mxu0 %v600_v0  ;;  %466 = vmatprep.subr.mxu1 %v600_v0 }
  0x3a   :  { %414 = vmatpush3.msra.mxu0 %v75_v16  ;;  %467 = vmatpush3.msra.mxu1 %v205_v23  ;;  %p577_p5 = pnand %p576_p4, %p570_p1 }
  0x3b   :  { %415 = vmatprep.subr.mxu0 %v600_v0  ;;  %468 = vmatprep.subr.mxu1 %v600_v0 }
  0x3c   :  { %416 = vmatpush3.msra.mxu0 %v74_v18  ;;  %469 = vmatpush3.msra.mxu1 %v204_v25 }
  0x3d   :  { %417 = vmatprep.subr.mxu0 %v600_v0  ;;  %470 = vmatprep.subr.mxu1 %v600_v0 }
  0x3e   :  { %418 = vmatpush3.msra.mxu0 %v73_v20  ;;  %471 = vmatpush3.msra.mxu1 %v203_v27 }
  0x3f   :  { %419 = vmatprep.subr.mxu0 %v600_v0  ;;  %472 = vmatprep.subr.mxu1 %v600_v0 }
  0x40   :  { %420 = vmatpush3.msra.mxu0 %v72_v22  ;;  %473 = vmatpush3.msra.mxu1 %v202_v30 }
  0x41   :  { %421 = vmatprep.subr.mxu0 %v600_v0  ;;  %474 = vmatprep.subr.mxu1 %v600_v0 }
  0x42   :  { %422 = vmatpush3.msra.mxu0 %v71_v24  ;;  %475 = vmatpush3.msra.mxu1 %v201_v37 }
  0x43   :  { %423 = vmatprep.subr.mxu0 %v600_v0  ;;  %476 = vmatprep.subr.mxu1 %v600_v0 }
  0x44   :  { %424 = vmatpush3.msra.mxu0 %v70_v26  ;;  %477 = vmatpush3.msra.mxu1 %v200_v38 }
  0x45   :  { %425 = vmatprep.subr.mxu0 %v600_v0  ;;  %478 = vmatprep.subr.mxu1 %v600_v0 }
  0x46   :  { %426 = vmatpush3.msra.mxu0 %v69_v28  ;;  %479 = vmatpush3.msra.mxu1 %v199_v39 }
  0x47   :  { %428 = vmatmul.mubr.f32.vlgmr.msra.gmra.mxu0 %v62_v29 }
  0x48   :  { %430 = vmatprep.mubr.msk.f32.mxu0 %vm601_vm0, %v600_v0 }
  0x4b   :  { %431 = vmatmul.mubr.f32.gmra.mxu0 %v63_v31 }
  0x4c   :  { %433 = vmatprep.mubr.msk.f32.mxu0 %vm601_vm0, %v600_v0 }
  0x4f   :  { %434 = vmatmul.mubr.f32.gmra.mxu0 %v64_v32 }
  0x50   :  { %436 = vmatprep.mubr.msk.f32.mxu0 %vm601_vm0, %v600_v0 }
  0x53   :  { %437 = vmatmul.mubr.f32.gmra.mxu0 %v65_v33 }
  0x54   :  { %439 = vmatprep.mubr.msk.f32.mxu0 %vm601_vm0, %v600_v0 }
  0x57   :  { %440 = vmatmul.mubr.f32.gmra.mxu0 %v66_v34 }
  0x58   :  { %442 = vmatprep.mubr.msk.f32.mxu0 %vm601_vm0, %v600_v0 }
  0x5b   :  { %443 = vmatmul.mubr.f32.gmra.mxu0 %v67_v35 }
  0x5c   :  { %445 = vmatprep.mubr.msk.f32.mxu0 %vm601_vm0, %v600_v0 }
  0x5f   :  { %446 = vmatmul.mubr.f32.gmra.mxu0 %v68_v36 }
 0x107   :  { %v158_v41 = vpop.f32.mrf.mxu0 }
 0x108   :  { %v159_v42 = vadd.f32 %v347_v40, %v158_v41 }
 0x109   :  { %v429_v43 = vpop.f32.mrf.mxu0 }
 0x10a   :  { %v192_v44 = vmax.f32 %v159_v42, 0.0 }
 0x10b   :  { %v163_v45 = vpop.f32.mrf.mxu0 }
 0x10c   :  { %v164_v46 = vadd.f32 %v347_v40, %v163_v45  ;;  %481 = vmatmul.mubr.f32.vlgmr.msra.gmra.mxu1 %v192_v44 }
 0x10d   :  { %v432_v47 = vpop.f32.mrf.mxu0  ;;  %483 = vmatprep.mubr.msk.f32.mxu1 %vm601_vm0, %v600_v0 }
 0x10e   :  { %v193_v48 = vmax.f32 %v164_v46, 0.0 }
 0x10f   :  { %v168_v49 = vpop.f32.mrf.mxu0 }
 0x110   :  { %v169_v50 = vadd.f32 %v347_v40, %v168_v49  ;;  %484 = vmatmul.mubr.f32.gmra.mxu1 %v193_v48 }
 0x111   :  { %v435_v51 = vpop.f32.mrf.mxu0  ;;  %486 = vmatprep.mubr.msk.f32.mxu1 %vm601_vm0, %v600_v0 }
 0x112   :  { %v194_v52 = vmax.f32 %v169_v50, 0.0 }
 0x113   :  { %v173_v53 = vpop.f32.mrf.mxu0 }
 0x114   :  { %v174_v54 = vadd.f32 %v347_v40, %v173_v53  ;;  %487 = vmatmul.mubr.f32.gmra.mxu1 %v194_v52 }
 0x115   :  { %v438_v55 = vpop.f32.mrf.mxu0  ;;  %489 = vmatprep.mubr.msk.f32.mxu1 %vm601_vm0, %v600_v0 }
 0x116   :  { %v195_v56 = vmax.f32 %v174_v54, 0.0 }
 0x117   :  { %v178_v57 = vpop.f32.mrf.mxu0 }
 0x118   :  { %v179_v58 = vadd.f32 %v347_v40, %v178_v57  ;;  %490 = vmatmul.mubr.f32.gmra.mxu1 %v195_v56 }
 0x119   :  { %v441_v59 = vpop.f32.mrf.mxu0  ;;  %492 = vmatprep.mubr.msk.f32.mxu1 %vm601_vm0, %v600_v0 }
 0x11a   :  { %v196_v60 = vmax.f32 %v179_v58, 0.0 }
 0x11b   :  { %v183_v61 = vpop.f32.mrf.mxu0 }
 0x11c   :  { %v184_v62 = vadd.f32 %v347_v40, %v183_v61  ;;  %493 = vmatmul.mubr.f32.gmra.mxu1 %v196_v60 }
 0x11d   :  { %v444_v63 = vpop.f32.mrf.mxu0  ;;  %495 = vmatprep.mubr.msk.f32.mxu1 %vm601_vm0, %v600_v0 }
 0x11e   :  { %v197_v1 = vmax.f32 %v184_v62, 0.0 }
 0x11f   :  { %v188_v2 = vpop.f32.mrf.mxu0 }
 0x120   :  { %v189_v3 = vadd.f32 %v347_v40, %v188_v2  ;;  %496 = vmatmul.mubr.f32.gmra.mxu1 %v197_v1 }
 0x121   :  { %v447_v4 = vpop.f32.mrf.mxu0  ;;  %498 = vmatprep.mubr.msk.f32.mxu1 %vm601_vm0, %v600_v0 }
 0x122   :  { %v198_v5 = vmax.f32 %v189_v3, 0.0 }
 0x124   :  { %499 = vmatmul.mubr.f32.gmra.mxu1 %v198_v5 }
 0x1cc   :  { %v288_v7 = vpop.f32.mrf.mxu1 }
 0x1cd   :  { %v289_v8 = vadd.f32 %v348_v6, %v288_v7 }
 0x1ce   :  { %v482_v9 = vpop.f32.mrf.mxu1 }
 0x1cf   :  { %322 = vst [vmem:[#allocation8] sm:$0xff] %v289_v8 }
 0x1d0   :  { %v293_v10 = vpop.f32.mrf.mxu1 }
 0x1d1   :  { %v294_v11 = vadd.f32 %v348_v6, %v293_v10 }
 0x1d2   :  { %v485_v12 = vpop.f32.mrf.mxu1 }
 0x1d3   :  { %323 = vst [vmem:[#allocation8 + $0x8] sm:$0xff] %v294_v11 }
 0x1d4   :  { %v298_v13 = vpop.f32.mrf.mxu1 }
 0x1d5   :  { %v299_v14 = vadd.f32 %v348_v6, %v298_v13 }
 0x1d6   :  { %v488_v15 = vpop.f32.mrf.mxu1 }
 0x1d7   :  { %324 = vst [vmem:[#allocation8 + $0x10] sm:$0xff] %v299_v14 }
 0x1d8   :  { %v303_v16 = vpop.f32.mrf.mxu1 }
 0x1d9   :  { %v304_v0 = vadd.f32 %v348_v6, %v303_v16 }
 0x1da   :  { %v491_v17 = vpop.f32.mrf.mxu1 }
 0x1db   :  { %325 = vst [vmem:[#allocation8 + $0x18] sm:$0xff] %v304_v0 }
 0x1dc   :  { %v308_v18 = vpop.f32.mrf.mxu1 }
 0x1dd   :  { %v309_v19 = vadd.f32 %v348_v6, %v308_v18 }
 0x1de   :  { %v494_v20 = vpop.f32.mrf.mxu1 }
 0x1df   :  { %326 = vst [vmem:[#allocation8 + $0x20] sm:$0xff] %v309_v19 }
 0x1e0   :  { %v313_v21 = vpop.f32.mrf.mxu1 }
 0x1e1   :  { %v314_v22 = vadd.f32 %v348_v6, %v313_v21 }
 0x1e2   :  { %v497_v23 = vpop.f32.mrf.mxu1 }
 0x1e3   :  { %327 = vst [vmem:[#allocation8 + $0x28] sm:$0xff] %v314_v22 }
 0x1e4   :  { %v318_v24 = vpop.f32.mrf.mxu1 }
 0x1e5   :  { %v319_v25 = vadd.f32 %v348_v6, %v318_v24 }
 0x1e6   :  { %v500_v26 = vpop.f32.mrf.mxu1 }
 0x1e7   :  { %328 = vst [vmem:[#allocation8 + $0x30] sm:$0xff] %v319_v25 }
 0x1e8   :  { %580 = shalt.err (!%p577_p5)
}
 0x1e9   :  { %340 = dma.vmem_to_hbm [thread:$0]  %s335_s10, 896, %s728_s5, [#allocation4], %s597_s23, %s597_s23, %s598_s24  }
 0x1ea   :  { %593 = dma.done.wait [#allocation4], 896  }
 0x1eb   :  { %594 = vsyncadd [#allocation4], 4294966400 }
 0x1ec   :  { %344 = vsyncpa [#allocation3], 1 }
 0x1ed   :  { %345 = vsyncpa [#allocation6], 1 }
 0x1ee   :  { %346 = vsyncpa [#allocation4], 1 }

</bundles_post_ra>
